<compile_context>
chip_gen: v7x
topology: tpu7x:2x2x1
jax: 0.10.0
libtpu: 0.0.40
codegen_flags: <defaults>
</compile_context>

<pallas_src>
import functools
import math
from typing import NamedTuple

import jax
import jax.numpy as jnp
from jax.experimental import pallas as pl
from jax.experimental.pallas import tpu as pltpu


def _round_up(x: int, m: int) -> int:
    return (x + m - 1) // m * m


def _vmem_limit_bytes(requested: int) -> int:
    """Device-aware VMEM budget: ~80% of physical, never above 100 MiB.

    v7x (64 MiB physical)  -> ~51 MiB cap (headroom for compiler scratch).
    v5e/v6e (128 MiB)      -> 100 MiB cap.
    """
    try:
        phys = int(pltpu.get_tpu_info().vmem_capacity_bytes)
    except Exception:  # pragma: no cover - conservative fallback
        phys = 64 << 20
    cap = min(int(phys * 0.80), 100 << 20)
    return max(min(int(requested), cap), 16 << 20)


# ---------------------------------------------------------------------------
# Kernels
# ---------------------------------------------------------------------------

def _fc_relu_kernel_f32out(x_ref, w_ref, b_ref, o_ref):
    """fp32 output: accumulate directly into the VMEM-resident output block."""
    k = pl.program_id(2)
    partial = jnp.dot(x_ref[...], w_ref[...], preferred_element_type=jnp.float32)

    @pl.when(k == 0)
    def _():
        o_ref[...] = partial

    @pl.when(k > 0)
    def _():
        o_ref[...] += partial

    @pl.when(k == pl.num_programs(2) - 1)
    def _():
        o_ref[...] = jnp.maximum(o_ref[...] + b_ref[...], 0.0)


def _fc_relu_kernel_acc(x_ref, w_ref, b_ref, o_ref, acc_ref):
    """Narrow output dtypes: fp32 scratch accumulator, cast in the epilogue."""
    k = pl.program_id(2)
    partial = jnp.dot(x_ref[...], w_ref[...], preferred_element_type=jnp.float32)

    @pl.when(k == 0)
    def _():
        acc_ref[...] = partial

    @pl.when(k > 0)
    def _():
        acc_ref[...] += partial

    @pl.when(k == pl.num_programs(2) - 1)
    def _():
        o_ref[...] = jnp.maximum(acc_ref[...] + b_ref[...], 0.0).astype(o_ref.dtype)


# ---------------------------------------------------------------------------
# Parameter preparation (done ONCE, outside the hot path)
# ---------------------------------------------------------------------------

class FCParams(NamedTuple):
    wt: jax.Array   # (Kp, Np) pre-transposed, zero-padded, cast to compute dtype
    b: jax.Array    # (1, Np)  fp32, zero-padded
    n: int          # true output features
    k: int          # true input features
    tn: int         # N tile used for padding (must be reused at call time)
    tk: int         # K tile used for padding (must be reused at call time)


def prepare_fc_params(weight, bias, *, tn=512, tk=512, use_bf16=True,
                      batch_hint=None) -> FCParams:
    """Pre-transpose/pad/cast the nn.Linear parameters once.

    weight: (N, K) PyTorch layout;  bias: (N,).
    batch_hint: expected batch size; if it implies a single M tile, tn is
    clamped so the N axis has >=2 tiles (keeps both v7x TensorCores busy).
    """
    N, K = weight.shape
    tn = min(tn, _round_up(N, 128))
    tk = min(tk, _round_up(K, 128))

    if batch_hint is not None and batch_hint <= 512:  # single M tile expected
        np128 = _round_up(N, 128)
        if np128 >= 256:
            tn = min(tn, _round_up(np128 // 2, 128))

    Np, Kp = _round_up(N, tn), _round_up(K, tk)
    compute_dtype = jnp.bfloat16 if use_bf16 else weight.dtype

    wt = jnp.pad(weight.T, ((0, Kp - K), (0, Np - N))).astype(compute_dtype)
    b = jnp.pad(bias, (0, Np - N)).reshape(1, Np).astype(jnp.float32)
    return FCParams(wt=wt, b=b, n=int(N), k=int(K), tn=int(tn), tk=int(tk))


# ---------------------------------------------------------------------------
# Forward pass
# ---------------------------------------------------------------------------

@functools.partial(jax.jit,
                   static_argnames=("n", "tm", "tn", "tk", "weight_buffers"))
def fully_connected_relu(x, wt, b, *, n, tm=512, tn=512, tk=512,
                         weight_buffers=2):
    """relu(x @ W.T + bias) with pre-prepared (Kp, Np) weight `wt`.

    x : (B, K) activations (output keeps x.dtype).
    wt: (Kp, Np) from prepare_fc_params.   b: (1, Np) fp32.
    n : true output feature count.  tn/tk must match prepare_fc_params.
    """
    B, K = x.shape
    Kp, Np = wt.shape
    assert K <= Kp and Np % tn == 0 and Kp % tk == 0, "tile/pad mismatch"

    compute_dtype = wt.dtype
    out_dtype = x.dtype

    # bf16 packs [16,128] per vreg -> align rows to 16 on the bf16 path.
    row_align = 16 if compute_dtype == jnp.bfloat16 else 8
    tm = min(tm, _round_up(B, row_align))
    Bp = _round_up(B, tm)

    xp = jnp.pad(x, ((0, Bp - B), (0, Kp - K))).astype(compute_dtype)

    grid = (Bp // tm, Np // tn, Kp // tk)

    accumulate_in_out = (out_dtype == jnp.float32)
    kernel = _fc_relu_kernel_f32out if accumulate_in_out else _fc_relu_kernel_acc
    scratch = [] if accumulate_in_out else [pltpu.VMEM((tm, tn), jnp.float32)]

    w_spec_kwargs = {}
    if weight_buffers != 2:  # optional deeper pipelining of the weight stream
        w_spec_kwargs["pipeline_mode"] = pl.Buffered(weight_buffers)

    isz = jnp.dtype(compute_dtype).itemsize
    osz = jnp.dtype(out_dtype).itemsize
    vmem_req = (2 * (tm * tk * isz + tn * 4 + tm * tn * osz)
                + max(weight_buffers, 2) * tk * tn * isz
                + (0 if accumulate_in_out else tm * tn * 4)
                + (4 << 20))
    vmem_limit = _vmem_limit_bytes(vmem_req)

    cost = pl.CostEstimate(
        flops=2 * Bp * Np * Kp,
        transcendentals=0,
        # account for re-streaming: x read once per N tile, w once per M tile
        bytes_accessed=(Bp * Kp * isz * grid[1]
                        + Kp * Np * isz * grid[0]
                        + Np * 4
                        + Bp * Np * osz),
    )

    out = pl.pallas_call(
        kernel,
        out_shape=jax.ShapeDtypeStruct((Bp, Np), out_dtype),
        grid_spec=pltpu.PrefetchScalarGridSpec(
            num_scalar_prefetch=0,
            grid=grid,
            in_specs=[
                pl.BlockSpec((tm, tk), lambda i, j, k: (i, k)),                 # x
                pl.BlockSpec((tk, tn), lambda i, j, k: (k, j), **w_spec_kwargs),  # W.T
                pl.BlockSpec((1, tn), lambda i, j, k: (0, j)),                  # bias
            ],
            out_specs=pl.BlockSpec((tm, tn), lambda i, j, k: (i, j)),
            scratch_shapes=scratch,
        ),
        compiler_params=pltpu.CompilerParams(
            dimension_semantics=("parallel", "parallel", "arbitrary"),
            vmem_limit_bytes=int(vmem_limit),
        ),
        cost_estimate=cost,
    )(xp, wt, b)

    return out[:B, :n]


# ---------------------------------------------------------------------------
# Init helpers (match the PyTorch module's _initialize)
# ---------------------------------------------------------------------------

def xavier_uniform(key, out_features, in_features, dtype=jnp.float32):
    # Matches torch.nn.init.xavier_uniform_ (gain=1.0) for a Linear weight.
    limit = math.sqrt(6.0 / (in_features + out_features))
    return jax.random.uniform(
        key, (out_features, in_features), dtype=dtype, minval=-limit, maxval=limit
    )


if __name__ == "__main__":
    key = jax.random.PRNGKey(0)
    k_x, k_w = jax.random.split(key)

    batch, input_size, output_size = 8, 32, 64

    x = jax.random.normal(k_x, (batch, input_size), dtype=jnp.float32)
    weight = xavier_uniform(k_w, output_size, input_size)   # xavier_uniform_
    bias = jnp.zeros((output_size,), dtype=jnp.float32)     # zeros_

    ref = jnp.maximum(x @ weight.T + bias, 0.0)

    # Default (bf16 MXU compute, fp32 accumulation) — params prepared once.
    p_bf16 = prepare_fc_params(weight, bias, use_bf16=True, batch_hint=batch)
    out_bf16 = fully_connected_relu(
        x, p_bf16.wt, p_bf16.b, n=p_bf16.n, tn=p_bf16.tn, tk=p_bf16.tk)
    out_bf16 = jax.block_until_ready(out_bf16)
    assert out_bf16.shape == (batch, output_size)
    assert jnp.allclose(out_bf16, ref, atol=2e-2, rtol=2e-2)

    # Full-precision path (fp32 compute) — tight tolerance.
    p_f32 = prepare_fc_params(weight, bias, use_bf16=False, batch_hint=batch)
    out_f32 = fully_connected_relu(
        x, p_f32.wt, p_f32.b, n=p_f32.n, tn=p_f32.tn, tk=p_f32.tk)
    out_f32 = jax.block_until_ready(out_f32)
    assert out_f32.shape == (batch, output_size)
    assert jnp.allclose(out_f32, ref, atol=1e-5, rtol=1e-5)

    print("KERNEL_OK")
</pallas_src>

<mosaic_0001>
module attributes {stable_mosaic.version = 11 : i64} {
  func.func @_fc_relu_kernel_f32out(%arg0: i32, %arg1: i32, %arg2: i32, %arg3: memref<16x128xbf16, #tpu.memory_space<vmem>>, %arg4: memref<128x128xbf16, #tpu.memory_space<vmem>>, %arg5: memref<1x128xf32, #tpu.memory_space<vmem>>, %arg6: memref<16x128xf32, #tpu.memory_space<vmem>>) attributes {dimension_semantics = [#tpu.dimension_semantics<parallel>, #tpu.dimension_semantics<parallel>, #tpu.dimension_semantics<arbitrary>], iteration_bounds = array<i64: 1, 1, 1>, scalar_prefetch = 0 : i64, scratch_operands = 0 : i64, tpu.core_type = #tpu.core_type<tc>, window_params = [{transform_indices = @transform_0, window_bounds = array<i64: 16, 128>}, {transform_indices = @transform_1, window_bounds = array<i64: 128, 128>}, {transform_indices = @transform_2, window_bounds = array<i64: 1, 128>}, {transform_indices = @transform_3, window_bounds = array<i64: 16, 128>}]} {
    %c0 = arith.constant 0 : index
    %c0_0 = arith.constant 0 : index
    %0 = vector.load %arg3[%c0, %c0_0] : memref<16x128xbf16, #tpu.memory_space<vmem>>, vector<16x128xbf16>
    %c0_1 = arith.constant 0 : index
    %c0_2 = arith.constant 0 : index
    %1 = vector.load %arg4[%c0_1, %c0_2] : memref<128x128xbf16, #tpu.memory_space<vmem>>, vector<128x128xbf16>
    %cst = arith.constant dense<0.000000e+00> : vector<16x128xf32>
    %2 = tpu.matmul %0, %1, %cst {dimension_numbers = #tpu.dot_dimension_numbers<[1], [0], [0], [1], [0, 0, 1, 1], [], []>} : vector<16x128xbf16>, vector<128x128xbf16>, vector<16x128xf32> -> vector<16x128xf32>
    %c0_i32 = arith.constant 0 : i32
    %3 = arith.cmpi eq, %arg2, %c0_i32 : i32
    %4 = arith.extui %3 : i1 to i32
    %c0_i32_3 = arith.constant 0 : i32
    %5 = arith.cmpi ne, %4, %c0_i32_3 : i32
    scf.if %5 {
      %c0_8 = arith.constant 0 : index
      %c0_9 = arith.constant 0 : index
      %12 = vector.load %arg6[%c0_8, %c0_9] : memref<16x128xf32, #tpu.memory_space<vmem>>, vector<16x128xf32>
      tpu.vector_store %arg6[%c0_8, %c0_9], %2 {strides = array<i32>} : memref<16x128xf32, #tpu.memory_space<vmem>>, vector<16x128xf32>,
    } else {
    }
    %c0_i32_4 = arith.constant 0 : i32
    %6 = arith.cmpi sgt, %arg2, %c0_i32_4 : i32
    %7 = arith.extui %6 : i1 to i32
    %c0_i32_5 = arith.constant 0 : i32
    %8 = arith.cmpi ne, %7, %c0_i32_5 : i32
    scf.if %8 {
      %c0_8 = arith.constant 0 : index
      %c0_9 = arith.constant 0 : index
      %12 = vector.load %arg6[%c0_8, %c0_9] : memref<16x128xf32, #tpu.memory_space<vmem>>, vector<16x128xf32>
      %13 = arith.addf %12, %2 : vector<16x128xf32>
      %c0_10 = arith.constant 0 : index
      %c0_11 = arith.constant 0 : index
      %14 = vector.load %arg6[%c0_10, %c0_11] : memref<16x128xf32, #tpu.memory_space<vmem>>, vector<16x128xf32>
      tpu.vector_store %arg6[%c0_10, %c0_11], %13 {strides = array<i32>} : memref<16x128xf32, #tpu.memory_space<vmem>>, vector<16x128xf32>,
    } else {
    }
    %c0_i32_6 = arith.constant 0 : i32
    %9 = arith.cmpi eq, %arg2, %c0_i32_6 : i32
    %10 = arith.extui %9 : i1 to i32
    %c0_i32_7 = arith.constant 0 : i32
    %11 = arith.cmpi ne, %10, %c0_i32_7 : i32
    scf.if %11 {
      %c0_8 = arith.constant 0 : index
      %c0_9 = arith.constant 0 : index
      %12 = vector.load %arg6[%c0_8, %c0_9] : memref<16x128xf32, #tpu.memory_space<vmem>>, vector<16x128xf32>
      %c0_10 = arith.constant 0 : index
      %c0_11 = arith.constant 0 : index
      %13 = vector.load %arg5[%c0_10, %c0_11] : memref<1x128xf32, #tpu.memory_space<vmem>>, vector<1x128xf32>
      %14 = vector.broadcast %13 : vector<1x128xf32> to vector<16x128xf32>
      %15 = arith.addf %12, %14 : vector<16x128xf32>
      %cst_12 = arith.constant 0.000000e+00 : f32
      %16 = vector.broadcast %cst_12 : f32 to vector<16x128xf32>
      %17 = arith.maximumf %15, %16 : vector<16x128xf32>
      %c0_13 = arith.constant 0 : index
      %c0_14 = arith.constant 0 : index
      %18 = vector.load %arg6[%c0_13, %c0_14] : memref<16x128xf32, #tpu.memory_space<vmem>>, vector<16x128xf32>
      tpu.vector_store %arg6[%c0_13, %c0_14], %17 {strides = array<i32>} : memref<16x128xf32, #tpu.memory_space<vmem>>, vector<16x128xf32>,
    } else {
    }
    return
  }
  func.func @transform_0(%arg0: i32, %arg1: i32, %arg2: i32) -> (i32, i32) {
    %c0_i32 = arith.constant 0 : i32
    return %arg0, %arg2 : i32, i32
  }
  func.func @transform_1(%arg0: i32, %arg1: i32, %arg2: i32) -> (i32, i32) {
    %c0_i32 = arith.constant 0 : i32
    return %arg2, %arg1 : i32, i32
  }
  func.func @transform_2(%arg0: i32, %arg1: i32, %arg2: i32) -> (i32, i32) {
    %c0_i32 = arith.constant 0 : i32
    %c0_i32_0 = arith.constant 0 : i32
    return %c0_i32, %arg1 : i32, i32
  }
  func.func @transform_3(%arg0: i32, %arg1: i32, %arg2: i32) -> (i32, i32) {
    %c0_i32 = arith.constant 0 : i32
    return %arg0, %arg1 : i32, i32
  }
}

</mosaic_0001>

<bundles_post_ra>
// kernel: fully_connected_relu.1
= control target key start
LH: loop header
LB: loop body
LE: loop exit
PB: predicated region body
PF: predicated region fallthrough
CT: control target
= control target key end

     0   :  { %8 = vsyncpa [#allocation3], 0  ;;  %s258_s12 = smov [#allocation2]   ;;  %s307_s0 = inlined_call_operand.vmem [shape: bf16[16,128], index: 0, kind: input, shape index: {}]   ;;  %s308_s1 = inlined_call_operand.hbm [shape: bf16[128,128], index: 1, kind: input, shape index: {}]   ;;  %s309_s2 = inlined_call_operand.vmem [shape: f32[1,128], index: 2, kind: input, shape index: {}]   ;;  %s310_s3 = inlined_call_operand.vmem [shape: f32[16,128], index: 3, kind: output, shape index: {}]  }
   0x1   :  { %s16_s13 = sshll.u32 %s258_s12, 4  ;;  %s234_s16 = scalar_lea.hbm %s308_s1, 1024  ;;  %s17_s13 = int_to_ptr.vmem [resolvable:$true] %s16_s13 }
   0x2   :  { %p235_p0 = scmp.ne.s32.totalorder %s308_s1, %s234_s16  ;;  %p238_p1 = scmp.lt.u32.totalorder %s234_s16, %s308_s1 }
   0x4   :  { %p240_p2 = pnand %p238_p1, %p235_p0 }
   0x6   :  { %243 = shalt.err (!%p240_p2)
}
   0x7   :  { %s244_s21 = scalar_lea.vmem %s17_s13, 1024  ;;  %p249_p4 = scmp.lt.s32.totalorder %s17_s13, %s17_s13 }
   0x8   :  { %p245_p3 = scmp.ne.s32.totalorder %s17_s13, %s244_s21  ;;  %p250_p5 = scmp.lt.s32.totalorder %s244_s21, %s244_s21 }
   0xa   :  { %p251_p6 = por %p250_p5, %p249_p4 }
   0xc   :  { %p252_p7 = pnand %p251_p6, %p245_p3 }
   0xe   :  { %255 = shalt.err (!%p252_p7)
}
   0xf   :  { %s259_s22 = smov 64   ;;  %s260_s23 = smov 4  }
  0x10   :  { %22 = dma.hbm_to_vmem [thread:$0]  %s308_s1, 1024, %s17_s13, [#allocation3], %s259_s22, %s259_s22, %s260_s23  }
  0x11   :  { %256 = dma.done.wait [#allocation3], 1024  }
  0x12   :  { %257 = vsyncadd [#allocation3], 4294966272  ;;  %v261_v0 = vmov 0.0   ;;  %vm262_vm0 = vmmov 0   ;;  %v225_v1 = vld [vmem:[#allocation2] sm:$0xff]   ;;  %v226_v2 = vld [vmem:[#allocation2 + $0x8] sm:$0xff]  }
  0x13   :  { %200 = vmatprep.subr.bf16.mxu0 %v261_v0  ;;  %216 = vmatprep.mubr.msk.bf16.mxu0 %vm262_vm0, %v261_v0  ;;  %v227_v3 = vld [vmem:[#allocation2 + $0x10] sm:$0xff]   ;;  %v228_v4 = vld [vmem:[#allocation2 + $0x18] sm:$0xff]   ;;  %v229_v5 = vld [vmem:[#allocation2 + $0x20] sm:$0xff]  }
  0x14   :  { %201 = vmatpush3.bf16.msra.mxu0 %v225_v1  ;;  %v230_v6 = vld [vmem:[#allocation2 + $0x28] sm:$0xff]   ;;  %v231_v7 = vld [vmem:[#allocation2 + $0x30] sm:$0xff]   ;;  %v232_v8 = vld [vmem:[#allocation2 + $0x38] sm:$0xff]  }
  0x15   :  { %202 = vmatprep.subr.bf16.mxu0 %v261_v0  ;;  %v233_v9 = vld [vmem:[%s307_s0] sm:$0xff]  }
  0x16   :  { %v190_v10 = vld [vmem:[%s309_s2] ss:$0 sm:$0xff] }
  0x18   :  { %203 = vmatpush3.bf16.msra.mxu0 %v226_v2 }
  0x19   :  { %204 = vmatprep.subr.bf16.mxu0 %v261_v0 }
  0x1c   :  { %205 = vmatpush3.bf16.msra.mxu0 %v227_v3 }
  0x1d   :  { %206 = vmatprep.subr.bf16.mxu0 %v261_v0 }
  0x20   :  { %207 = vmatpush3.bf16.msra.mxu0 %v228_v4 }
  0x21   :  { %208 = vmatprep.subr.bf16.mxu0 %v261_v0 }
  0x24   :  { %209 = vmatpush3.bf16.msra.mxu0 %v229_v5 }
  0x25   :  { %210 = vmatprep.subr.bf16.mxu0 %v261_v0 }
  0x28   :  { %211 = vmatpush3.bf16.msra.mxu0 %v230_v6 }
  0x29   :  { %212 = vmatprep.subr.bf16.mxu0 %v261_v0 }
  0x2c   :  { %213 = vmatpush3.bf16.msra.mxu0 %v231_v7 }
  0x2d   :  { %214 = vmatprep.subr.bf16.mxu0 %v261_v0 }
  0x30   :  { %215 = vmatpush3.bf16.msra.mxu0 %v232_v8 }
  0x33   :  { %217 = vmatmul.mubr.bf16.vlgmr.msra.gmra.mrb[0].mxu0 %v233_v9 }
 0x106   :  { %v135_v11 = vpop.f32.mrb[0].mxu0 }
 0x107   :  { %v170_v12 = vadd.f32 %v190_v10, %v135_v11  ;;  %v218_v13 = vpop.f32.mrb[1].mxu0 }
 0x108   :  { %v138_v14 = vpop.f32.mrb[2].mxu0 }
 0x109   :  { %v172_v15 = vmax.f32 %v170_v12, 0.0  ;;  %v171_v16 = vadd.f32 %v190_v10, %v138_v14  ;;  %v219_v17 = vpop.f32.mrb[3].mxu0 }
 0x10b   :  { %174 = vst [vmem:[%s310_s3] sm:$0xff] %v172_v15  ;;  %v173_v18 = vmax.f32 %v171_v16, 0.0 }
 0x10d   :  { %175 = vst [vmem:[%s310_s3 + $0x8] sm:$0xff] %v173_v18 }
 0x10e   :  { %180 = vsyncpa [#allocation3], 1 }

</bundles_post_ra>
